<compile_context>
chip_gen: v5e
topology: v5e:2x2
jax: 0.10.0
libtpu: 0.0.40
codegen_flags: <defaults>
</compile_context>

<pallas_src>
import functools
import math

import jax
import jax.numpy as jnp
from jax.experimental import pallas as pl
from jax.experimental.pallas import tpu as pltpu


def _round_up(x, m):
    return ((x + m - 1) // m) * m


def _stream_sum_kernel(seq_ref, part_ref, *, tile_s, seq_len,
                       num_s_per_split, first_masked_block, needs_mask_path):
    """Accumulate 8 sublane-parallel partial row-sums of the (S, B*E) view."""
    c = pl.program_id(0)          # core-split index ("parallel", megacore on v7x)
    s = pl.program_id(1)          # S-tile index within the split ("arbitrary")

    @pl.when(s == 0)
    def _init():
        part_ref[...] = jnp.zeros_like(part_ref)

    g = c * num_s_per_split + s   # global S-block index (unclamped)

    def _sum_rows(tile_f32):
        # (tile_s, BE) -> (tile_s//8, 8, BE); summing over axis 0 keeps the
        # reduction as plain VPU adds (no cross-sublane XLU work per step).
        t = tile_f32.reshape(tile_s // 8, 8, tile_f32.shape[-1])
        return jnp.sum(t, axis=0)

    if needs_mask_path:
        @pl.when(g < first_masked_block)
        def _full_tile():  # steady state: plain sum, no masking ops
            part_ref[...] += _sum_rows(seq_ref[...].astype(jnp.float32))

        @pl.when(g >= first_masked_block)
        def _edge_tile():
            # Ragged final block and/or fully out-of-range blocks of an uneven
            # split: zero out rows past the true sequence length.
            tile = seq_ref[...].astype(jnp.float32)
            row = jax.lax.broadcasted_iota(jnp.int32, tile.shape, 0)
            tile = jnp.where(row + g * tile_s < seq_len, tile, 0.0)
            part_ref[...] += _sum_rows(tile)
    else:
        part_ref[...] += _sum_rows(seq_ref[...].astype(jnp.float32))


def _mlp_tail_kernel(pooled_ref, w1_ref, b1_ref, w2_ref, b2_ref, out_ref):
    """fc2(relu(fc1(pooled))) computed transposed (hidden on sublanes, batch on lanes)."""
    # fc1 (1/S already folded into w1): (H, E) x (B, E) contracted on E -> (H, B)
    h_t = jax.lax.dot_general(
        w1_ref[...], pooled_ref[...],
        dimension_numbers=(((1,), (1,)), ((), ())),
        preferred_element_type=jnp.float32)
    h_t = jnp.maximum(h_t + b1_ref[...], 0.0)                        # ReLU, (H, B)
    # fc2 with output_dim == 1: VPU multiply + sublane reduce -> lane-dense (1, B)
    out_ref[...] = jnp.sum(h_t * w2_ref[...], axis=0, keepdims=True) + b2_ref[...]


def baseline_mlp_forward(sequence, w1, b1, w2, b2, *, num_core_splits=2):
    """sequence: (S, B, E) f32 (or bf16).
    w1: (H, E), b1: (H,), w2: (1, H), b2: (1,)  -- torch nn.Linear layouts.
    Returns fc2(relu(fc1(sequence.mean(0)))).squeeze()  (shape (B,) for B > 1).
    """
    S, B, E = sequence.shape
    H = w1.shape[0]
    assert w2.shape[0] == 1, "BaselineMLP kernel assumes output_dim == 1"
    BE = B * E

    # ---- layout prep (free): lane-dense 2-D view of the sequence -----------
    seq2d = sequence.reshape(S, BE)

    # Fold 1/S of the mean into the constant fc1 weight; biases / fc2 weight
    # become columns for the transposed tail compute.
    w1_scaled = w1.astype(jnp.float32) / jnp.float32(S)              # (H, E)
    b1_col = b1.reshape(H, 1).astype(jnp.float32)                    # (H, 1)
    w2_col = w2.reshape(H, 1).astype(jnp.float32)                    # (H, 1) == fc2.weight.T
    b2_11 = b2.reshape(1, 1).astype(jnp.float32)                     # (1, 1)

    # ---- tile sizing from the PADDED VMEM footprint -------------------------
    itemsize = jnp.dtype(sequence.dtype).itemsize
    row_align = 8 * max(1, 4 // itemsize)        # sublane packing: 8 f32 / 16 bf16
    padded_row_bytes = _round_up(BE, 128) * itemsize

    try:
        vmem_cap = int(pltpu.get_tpu_info().vmem_capacity_bytes)
    except Exception:  # conservative fallback = v7x per-TensorCore VMEM
        vmem_cap = 64 * 1024 * 1024
    vmem_limit = min(int(vmem_cap * 0.8), 128 * 1024 * 1024)

    # ~45% of VMEM for the streamed sequence tile, split over the 2 pipeline
    # buffers BlockSpec allocates; the rest covers output blocks + internal scratch.
    per_buffer_budget = max(int(vmem_cap * 0.45) // 2, padded_row_bytes * row_align)
    tile_s = (per_buffer_budget // padded_row_bytes) // row_align * row_align
    tile_s = max(row_align, tile_s)
    # No point tiling finer than one tile per core-split.
    tile_s = min(tile_s, _round_up(pl.cdiv(S, max(1, num_core_splits)), row_align))

    num_s_total = pl.cdiv(S, tile_s)                       # total S-blocks
    num_splits = max(1, min(num_core_splits, num_s_total))
    num_s_per_split = pl.cdiv(num_s_total, num_splits)

    ragged = (S % tile_s) != 0
    first_masked_block = num_s_total - 1 if ragged else num_s_total
    needs_mask_path = (num_splits * num_s_per_split) > first_masked_block

    if num_splits * num_s_per_split > num_s_total:
        # Uneven split: clamp so out-of-range blocks re-read the last valid
        # block (their rows are then masked to zero in the kernel).
        def seq_index_map(c, s):
            return (jnp.minimum(c * num_s_per_split + s, num_s_total - 1), 0)
    else:
        def seq_index_map(c, s):
            return (c * num_s_per_split + s, 0)

    kernel = functools.partial(
        _stream_sum_kernel, tile_s=tile_s, seq_len=S,
        num_s_per_split=num_s_per_split,
        first_masked_block=first_masked_block,
        needs_mask_path=needs_mask_path)

    # Kernel 1: bandwidth-bound streaming sum over S, megacore-split on v7x.
    partials = pl.pallas_call(
        kernel,
        out_shape=jax.ShapeDtypeStruct((num_splits * 8, BE), jnp.float32),
        grid_spec=pltpu.PrefetchScalarGridSpec(
            num_scalar_prefetch=0,
            grid=(num_splits, num_s_per_split),
            in_specs=[pl.BlockSpec((tile_s, BE), seq_index_map)],
            out_specs=pl.BlockSpec((8, BE), lambda c, s: (c, 0)),
        ),
        compiler_params=pltpu.CompilerParams(
            dimension_semantics=("parallel", "arbitrary"),
            vmem_limit_bytes=vmem_limit,
        ),
    )(seq2d)

    # Combine per-split / per-sublane partial sums (<=16 x B*E, tiny) in the
    # wrapper, then run the MLP tail once as a small gridless kernel.
    pooled_sum = partials.reshape(num_splits * 8, B, E).sum(axis=0)   # (B, E)

    out = pl.pallas_call(
        _mlp_tail_kernel,
        out_shape=jax.ShapeDtypeStruct((1, B), jnp.float32),
    )(pooled_sum, w1_scaled, b1_col, w2_col, b2_11)

    # .squeeze(): (1, B) -> (B,) for B > 1 (scalar for B == 1), as in torch.
    return jnp.squeeze(out)


def init_linear_params(key, in_features, out_features):
    """Deterministic init mirroring nn.Linear defaults (uniform +/- 1/sqrt(fan_in)).
    Weight uses torch layout (out_features, in_features)."""
    kw, kb = jax.random.split(key)
    bound = 1.0 / math.sqrt(in_features)
    w = jax.random.uniform(kw, (out_features, in_features), jnp.float32,
                           minval=-bound, maxval=bound)
    b = jax.random.uniform(kb, (out_features,), jnp.float32,
                           minval=-bound, maxval=bound)
    return w, b


def _reference(sequence, w1, b1, w2, b2):
    pooled = sequence.astype(jnp.float32).mean(axis=0)                 # (B, E)
    return jnp.squeeze(jnp.maximum(pooled @ w1.T + b1, 0.0) @ w2.T + b2)


if __name__ == "__main__":
    # Small shapes consistent with the module: seq=8, batch=2, emb=32, hidden=32.
    S, B, E, H, O = 8, 2, 32, 32, 1

    key = jax.random.PRNGKey(0)
    k_seq, k1, k2, k_seq2 = jax.random.split(key, 4)

    sequence = jax.random.normal(k_seq, (S, B, E), jnp.float32)
    w1, b1 = init_linear_params(k1, E, H)   # (H, E), (H,)
    w2, b2 = init_linear_params(k2, H, O)   # (1, H), (1,)

    out = jax.block_until_ready(baseline_mlp_forward(sequence, w1, b1, w2, b2))
    ref = _reference(sequence, w1, b1, w2, b2)
    assert out.shape == ref.shape == (B,)
    assert jnp.allclose(out, ref, atol=1e-4, rtol=1e-4), (out, ref)

    # Also exercise the streaming path: ragged S that splits across the
    # (v7x) parallel axis.  Still tiny.
    S2 = 37
    seq2 = jax.random.normal(k_seq2, (S2, B, E), jnp.float32)
    out2 = jax.block_until_ready(baseline_mlp_forward(seq2, w1, b1, w2, b2))
    ref2 = _reference(seq2, w1, b1, w2, b2)
    assert out2.shape == ref2.shape == (B,)
    assert jnp.allclose(out2, ref2, atol=1e-4, rtol=1e-4), (out2, ref2)

    print("KERNEL_OK")
</pallas_src>

<mosaic_0001>
module attributes {stable_mosaic.version = 11 : i64} {
  func.func @_stream_sum_kernel(%arg0: i32, %arg1: i32, %arg2: memref<8x64xf32, #tpu.memory_space<vmem>>, %arg3: memref<8x64xf32, #tpu.memory_space<vmem>>) attributes {dimension_semantics = [#tpu.dimension_semantics<parallel>, #tpu.dimension_semantics<arbitrary>], iteration_bounds = array<i64: 1, 1>, scalar_prefetch = 0 : i64, scratch_operands = 0 : i64, tpu.core_type = #tpu.core_type<tc>, window_params = [{transform_indices = @transform_0, window_bounds = array<i64: 8, 64>}, {transform_indices = @transform_1, window_bounds = array<i64: 8, 64>}]} {
    %c0_i32 = arith.constant 0 : i32
    %0 = arith.cmpi eq, %arg1, %c0_i32 : i32
    %1 = arith.extui %0 : i1 to i32
    %c0_i32_0 = arith.constant 0 : i32
    %2 = arith.cmpi ne, %1, %c0_i32_0 : i32
    scf.if %2 {
      %cst_6 = arith.constant 0.000000e+00 : f32
      %9 = vector.broadcast %cst_6 : f32 to vector<8x64xf32>
      %c0_7 = arith.constant 0 : index
      %c0_8 = arith.constant 0 : index
      %10 = vector.load %arg3[%c0_7, %c0_8] : memref<8x64xf32, #tpu.memory_space<vmem>>, vector<8x64xf32>
      tpu.vector_store %arg3[%c0_7, %c0_8], %9 {strides = array<i32>} : memref<8x64xf32, #tpu.memory_space<vmem>>, vector<8x64xf32>,
    } else {
    }
    %c0 = arith.constant 0 : index
    %c0_1 = arith.constant 0 : index
    %3 = vector.load %arg3[%c0, %c0_1] : memref<8x64xf32, #tpu.memory_space<vmem>>, vector<8x64xf32>
    %c0_2 = arith.constant 0 : index
    %c0_3 = arith.constant 0 : index
    %4 = vector.load %arg2[%c0_2, %c0_3] : memref<8x64xf32, #tpu.memory_space<vmem>>, vector<8x64xf32>
    %5 = vector.shape_cast %4 : vector<8x64xf32> to vector<1x8x64xf32>
    %cst = arith.constant dense<0.000000e+00> : vector<8x64xf32>
    %6 = vector.multi_reduction <add>, %5, %cst [0] : vector<1x8x64xf32> to vector<8x64xf32>
    %7 = arith.addf %3, %6 : vector<8x64xf32>
    %c0_4 = arith.constant 0 : index
    %c0_5 = arith.constant 0 : index
    %8 = vector.load %arg3[%c0_4, %c0_5] : memref<8x64xf32, #tpu.memory_space<vmem>>, vector<8x64xf32>
    tpu.vector_store %arg3[%c0_4, %c0_5], %7 {strides = array<i32>} : memref<8x64xf32, #tpu.memory_space<vmem>>, vector<8x64xf32>,
    return
  }
  func.func @transform_0(%arg0: i32, %arg1: i32) -> (i32, i32) {
    %c1_i32 = arith.constant 1 : i32
    %0 = arith.muli %arg0, %c1_i32 : i32
    %1 = arith.addi %0, %arg1 : i32
    %c0_i32 = arith.constant 0 : i32
    %c0_i32_0 = arith.constant 0 : i32
    return %1, %c0_i32 : i32, i32
  }
  func.func @transform_1(%arg0: i32, %arg1: i32) -> (i32, i32) {
    %c0_i32 = arith.constant 0 : i32
    %c0_i32_0 = arith.constant 0 : i32
    return %arg0, %c0_i32 : i32, i32
  }
}

</mosaic_0001>

<bundles_post_ra>
// kernel: tpu_custom_call.1
= control target key start
LH: loop header
LB: loop body
LE: loop exit
PB: predicated region body
PF: predicated region fallthrough
CT: control target
= control target key end

     0   :  { %6 = vsyncpa [#allocation3], 0  ;;  %s130_s0 = inlined_call_operand.hbm [shape: f32[8,64], index: 0, kind: input, shape index: {}]   ;;  %s131_s1 = inlined_call_operand.hbm [shape: f32[8,64], index: 1, kind: output, shape index: {}]  }
   0x1   :  { %7 = vsyncpa [#allocation4], 0  ;;  %s16_s8 = sshll.u32 %s130_s0, 4  ;;  %s111_s9 = smov [#allocation2]   ;;  %s17_s8 = int_to_ptr.hbm [resolvable:$true] %s16_s8 }
   0x2   :  { %s18_s10 = sshll.u32 %s111_s9, 4  ;;  %s19_s10 = int_to_ptr.vmem [resolvable:$true] %s18_s10 }
   0x3   :  { %21 = dma.hbm_to_vmem [thread:$0]  %s17_s8, 128, %s19_s10, [#allocation3]  }
   0x4   :  { %107 = dma.done.wait [#allocation3], 128  }
   0x5   :  { %108 = vsyncadd [#allocation3], 4294967168  ;;  %vm31_vm0 = vcmask 523264   ;;  %v112_v0 = vmov 0.0   ;;  %s113_s11 = smov [#allocation5]   ;;  %s46_s15 = sshll.u32 %s131_s1, 4  ;;  %s47_s15 = int_to_ptr.hbm [resolvable:$true] %s46_s15 }
   0x6   :  { %32 = vst.msk [vmem:[#allocation5] sm:$0xff] %vm31_vm0, %v112_v0  ;;  %s44_s12 = sshll.u32 %s113_s11, 4  ;;  %v34_v1 = vld [vmem:[#allocation2] sm:$0xff]  ;;  %s45_s12 = int_to_ptr.vmem [resolvable:$true] %s44_s12 }
   0xd   :  { %v33_v2 = vld [vmem:[#allocation5] sm:$0xff] }
   0xe   :  { %v36_v3 = vadd.f32 %v34_v1, %v33_v2 }
  0x10   :  { %38 = vst.msk [vmem:[#allocation5] sm:$0xff] %vm31_vm0, %v36_v3 }
  0x11   :  { %49 = dma.vmem_to_hbm [thread:$0]  %s45_s12, 128, %s47_s15, [#allocation4]  }
  0x12   :  { %109 = dma.done.wait [#allocation4], 128  }
  0x13   :  { %110 = vsyncadd [#allocation4], 4294967168 }
  0x14   :  { %54 = vsyncpa [#allocation3], 1 }
  0x15   :  { %55 = vsyncpa [#allocation4], 1 }

</bundles_post_ra>
